<compile_context>
chip_gen: v6e
topology: v6e:2x2x1
jax: 0.10.0
libtpu: 0.0.40
codegen_flags: <defaults>
</compile_context>

<pallas_src>
import functools

import jax
import jax.numpy as jnp
from jax.experimental import pallas as pl
from jax.experimental.pallas import tpu as pltpu

EPS = 1e-5


def _round_up(x, m):
    return (x + m - 1) // m * m


def prenorm_linear_kernel(x_ref, gamma_ref, beta_ref, w_ref, b_ref, o_ref,
                          *, true_dim):
    # x_ref: (tm, dim_p) tile of the flattened, padded (rows_p, dim_p) input.
    x = x_ref[...].astype(jnp.float32)

    # --- LayerNorm over last dim, one-pass stats (biased var, like torch) ---
    # Padded lanes hold zeros and gamma/beta are zero there, so dividing by
    # the *true* dim gives exact statistics and zero output in padded lanes.
    inv_n = 1.0 / true_dim
    s = jnp.sum(x, axis=-1, keepdims=True)
    ss = jnp.sum(x * x, axis=-1, keepdims=True)
    mean = s * inv_n
    var = ss * inv_n - mean * mean
    inv = jax.lax.rsqrt(var + EPS)
    y = (x - mean) * inv
    y = y * gamma_ref[...].astype(jnp.float32) + beta_ref[...].astype(jnp.float32)

    # --- fn(x): Linear(dim, dim) on the normalized activations ---
    # bf16 operands -> fast MXU mode; f32 accumulation preserves accuracy.
    out = jnp.dot(y.astype(jnp.bfloat16), w_ref[...],
                  preferred_element_type=jnp.float32)
    out = out + b_ref[...].astype(jnp.float32)
    o_ref[...] = out.astype(o_ref.dtype)


def prenorm_linear(x, gamma, beta, w, b, *, tm=512):
    """x: (batch, seq, dim) -> (batch, seq, dim). w: (dim, dim) = (in, out)."""
    batch, seq, dim = x.shape
    rows = batch * seq

    # Lane-dense layout: pad the channel dim to a multiple of 128.
    dim_p = _round_up(dim, 128)
    # Row tile: multiple of 128 (MXU-friendly on v5e/v6e/v7x), clamped so tiny
    # inputs don't over-pad. Pad rows to a tile multiple instead of asserting.
    tm = min(tm, _round_up(rows, 128))
    rows_p = _round_up(rows, tm)

    x2 = x.reshape(rows, dim)
    if rows_p != rows or dim_p != dim:
        x2 = jnp.pad(x2, ((0, rows_p - rows), (0, dim_p - dim)))
    pad_d = dim_p - dim
    gamma2 = jnp.pad(gamma, (0, pad_d)).reshape(1, dim_p)
    beta2 = jnp.pad(beta, (0, pad_d)).reshape(1, dim_p)
    b2 = jnp.pad(b, (0, pad_d)).reshape(1, dim_p)
    # Weight kept resident in VMEM as bf16 (halves footprint + fast MXU path).
    # TODO(synk): for dim >= ~2048 (v7x 64 MiB VMEM) tile W over K/N with an
    # f32 accumulator + pl.when init/finalize instead of holding all of W.
    w_p = jnp.pad(w, ((0, pad_d), (0, pad_d))).astype(jnp.bfloat16)

    grid = (rows_p // tm,)

    # VMEM budget: double-buffered x/out tiles + (double-buffered) bf16 W.
    xb = x.dtype.itemsize
    vmem_bytes = (2 * tm * dim_p * xb          # x tiles
                  + 2 * tm * dim_p * xb        # out tiles
                  + 2 * dim_p * dim_p * 2      # bf16 W
                  + 8 * dim_p * 4)             # gamma/beta/bias
    vmem_limit = int(min(max(2 * vmem_bytes, 32 << 20), 120 << 20))

    cost = pl.CostEstimate(
        flops=2 * rows_p * dim_p * dim_p,
        transcendentals=0,
        bytes_accessed=2 * rows_p * dim_p * xb + dim_p * dim_p * 2,
    )

    kernel = functools.partial(prenorm_linear_kernel, true_dim=dim)

    out2 = pl.pallas_call(
        kernel,
        out_shape=jax.ShapeDtypeStruct((rows_p, dim_p), x.dtype),
        grid_spec=pltpu.PrefetchScalarGridSpec(
            num_scalar_prefetch=0,
            grid=grid,
            in_specs=[
                pl.BlockSpec((tm, dim_p), lambda i: (i, 0)),      # x tile
                pl.BlockSpec((1, dim_p), lambda i: (0, 0)),       # gamma
                pl.BlockSpec((1, dim_p), lambda i: (0, 0)),       # beta
                pl.BlockSpec((dim_p, dim_p), lambda i: (0, 0)),   # W (bf16)
                pl.BlockSpec((1, dim_p), lambda i: (0, 0)),       # bias
            ],
            out_specs=pl.BlockSpec((tm, dim_p), lambda i: (i, 0)),
        ),
        compiler_params=pltpu.CompilerParams(
            dimension_semantics=("parallel",),
            vmem_limit_bytes=vmem_limit,
        ),
        cost_estimate=cost,
    )(x2, gamma2, beta2, w_p, b2)

    return out2[:rows, :dim].reshape(batch, seq, dim)


def prenorm_linear_ref(x, gamma, beta, w, b):
    """Pure-JAX reference with the same numerics (f32 norm, bf16 matmul)."""
    xf = x.astype(jnp.float32)
    mean = jnp.mean(xf, axis=-1, keepdims=True)
    var = jnp.mean((xf - mean) ** 2, axis=-1, keepdims=True)
    y = (xf - mean) * jax.lax.rsqrt(var + EPS) * gamma + beta
    out = jnp.dot(y.astype(jnp.bfloat16), w.astype(jnp.bfloat16),
                  preferred_element_type=jnp.float32) + b
    return out.astype(x.dtype)


if __name__ == "__main__":
    key = jax.random.PRNGKey(0)
    batch, seq, dim = 2, 8, 32

    kx, kw, kb, kg, kbt = jax.random.split(key, 5)
    x = jax.random.normal(kx, (batch, seq, dim), dtype=jnp.float32)

    # LayerNorm params (perturbed from the PyTorch default weight=1, bias=0
    # so the affine path is actually exercised).
    gamma = 1.0 + 0.1 * jax.random.normal(kg, (dim,), dtype=jnp.float32)
    beta = 0.05 * jax.random.normal(kbt, (dim,), dtype=jnp.float32)

    # fn = Linear(dim, dim); w is (in, out) here (torch weight is (out, in)).
    w = jax.random.normal(kw, (dim, dim), dtype=jnp.float32) * (1.0 / jnp.sqrt(dim))
    b = jax.random.normal(kb, (dim,), dtype=jnp.float32) * 0.01

    out = prenorm_linear(x, gamma, beta, w, b)
    out = jax.block_until_ready(out)

    ref = prenorm_linear_ref(x, gamma, beta, w, b)
    assert out.shape == (batch, seq, dim)
    assert jnp.allclose(out, ref, atol=2e-3, rtol=2e-3), "mismatch vs reference"

    print("KERNEL_OK")
</pallas_src>

<mosaic_0001>
module attributes {stable_mosaic.version = 11 : i64} {
  func.func @prenorm_linear_kernel(%arg0: i32, %arg1: memref<128x128xf32, #tpu.memory_space<vmem>>, %arg2: memref<1x128xf32, #tpu.memory_space<vmem>>, %arg3: memref<1x128xf32, #tpu.memory_space<vmem>>, %arg4: memref<128x128xbf16, #tpu.memory_space<vmem>>, %arg5: memref<1x128xf32, #tpu.memory_space<vmem>>, %arg6: memref<128x128xf32, #tpu.memory_space<vmem>>) attributes {dimension_semantics = [#tpu.dimension_semantics<parallel>], iteration_bounds = array<i64: 1>, scalar_prefetch = 0 : i64, scratch_operands = 0 : i64, tpu.core_type = #tpu.core_type<tc>, window_params = [{transform_indices = @transform_0, window_bounds = array<i64: 128, 128>}, {pipeline_mode = #tpu.pipeline_mode<synchronous>, transform_indices = @transform_1, window_bounds = array<i64: 1, 128>}, {pipeline_mode = #tpu.pipeline_mode<synchronous>, transform_indices = @transform_2, window_bounds = array<i64: 1, 128>}, {pipeline_mode = #tpu.pipeline_mode<synchronous>, transform_indices = @transform_3, window_bounds = array<i64: 128, 128>}, {pipeline_mode = #tpu.pipeline_mode<synchronous>, transform_indices = @transform_4, window_bounds = array<i64: 1, 128>}, {transform_indices = @transform_5, window_bounds = array<i64: 128, 128>}]} {
    %c0 = arith.constant 0 : index
    %c0_0 = arith.constant 0 : index
    %0 = vector.load %arg1[%c0, %c0_0] : memref<128x128xf32, #tpu.memory_space<vmem>>, vector<128x128xf32>
    %cst = arith.constant dense<0.000000e+00> : vector<128xf32>
    %1 = vector.multi_reduction <add>, %0, %cst [1] : vector<128x128xf32> to vector<128xf32>
    %2 = vector.shape_cast %1 : vector<128xf32> to vector<128x1xf32>
    %3 = arith.mulf %0, %0 : vector<128x128xf32>
    %cst_1 = arith.constant dense<0.000000e+00> : vector<128xf32>
    %4 = vector.multi_reduction <add>, %3, %cst_1 [1] : vector<128x128xf32> to vector<128xf32>
    %5 = vector.shape_cast %4 : vector<128xf32> to vector<128x1xf32>
    %cst_2 = arith.constant 3.125000e-02 : f32
    %6 = vector.broadcast %cst_2 : f32 to vector<128x1xf32>
    %7 = arith.mulf %2, %6 : vector<128x1xf32>
    %cst_3 = arith.constant 3.125000e-02 : f32
    %8 = vector.broadcast %cst_3 : f32 to vector<128x1xf32>
    %9 = arith.mulf %5, %8 : vector<128x1xf32>
    %10 = arith.mulf %7, %7 : vector<128x1xf32>
    %11 = arith.subf %9, %10 : vector<128x1xf32>
    %cst_4 = arith.constant 9.99999974E-6 : f32
    %12 = vector.broadcast %cst_4 : f32 to vector<128x1xf32>
    %13 = arith.addf %11, %12 : vector<128x1xf32>
    %14 = math.rsqrt %13 : vector<128x1xf32>
    %15 = vector.broadcast %7 : vector<128x1xf32> to vector<128x128xf32>
    %16 = arith.subf %0, %15 : vector<128x128xf32>
    %17 = vector.broadcast %14 : vector<128x1xf32> to vector<128x128xf32>
    %18 = arith.mulf %16, %17 : vector<128x128xf32>
    %c0_5 = arith.constant 0 : index
    %c0_6 = arith.constant 0 : index
    %19 = vector.load %arg2[%c0_5, %c0_6] : memref<1x128xf32, #tpu.memory_space<vmem>>, vector<1x128xf32>
    %20 = vector.broadcast %19 : vector<1x128xf32> to vector<128x128xf32>
    %21 = arith.mulf %18, %20 : vector<128x128xf32>
    %c0_7 = arith.constant 0 : index
    %c0_8 = arith.constant 0 : index
    %22 = vector.load %arg3[%c0_7, %c0_8] : memref<1x128xf32, #tpu.memory_space<vmem>>, vector<1x128xf32>
    %23 = vector.broadcast %22 : vector<1x128xf32> to vector<128x128xf32>
    %24 = arith.addf %21, %23 : vector<128x128xf32>
    %25 = arith.truncf %24 : vector<128x128xf32> to vector<128x128xbf16>
    %c0_9 = arith.constant 0 : index
    %c0_10 = arith.constant 0 : index
    %26 = vector.load %arg4[%c0_9, %c0_10] : memref<128x128xbf16, #tpu.memory_space<vmem>>, vector<128x128xbf16>
    %cst_11 = arith.constant dense<0.000000e+00> : vector<128x128xf32>
    %27 = tpu.matmul %25, %26, %cst_11 {dimension_numbers = #tpu.dot_dimension_numbers<[1], [0], [0], [1], [0, 0, 1, 1], [], []>} : vector<128x128xbf16>, vector<128x128xbf16>, vector<128x128xf32> -> vector<128x128xf32>
    %c0_12 = arith.constant 0 : index
    %c0_13 = arith.constant 0 : index
    %28 = vector.load %arg5[%c0_12, %c0_13] : memref<1x128xf32, #tpu.memory_space<vmem>>, vector<1x128xf32>
    %29 = vector.broadcast %28 : vector<1x128xf32> to vector<128x128xf32>
    %30 = arith.addf %27, %29 : vector<128x128xf32>
    %c0_14 = arith.constant 0 : index
    %c0_15 = arith.constant 0 : index
    %31 = vector.load %arg6[%c0_14, %c0_15] : memref<128x128xf32, #tpu.memory_space<vmem>>, vector<128x128xf32>
    tpu.vector_store %arg6[%c0_14, %c0_15], %30 {strides = array<i32>} : memref<128x128xf32, #tpu.memory_space<vmem>>, vector<128x128xf32>,
    return
  }
  func.func @transform_0(%arg0: i32) -> (i32, i32) {
    %c0_i32 = arith.constant 0 : i32
    %c0_i32_0 = arith.constant 0 : i32
    return %arg0, %c0_i32 : i32, i32
  }
  func.func @transform_1(%arg0: i32) -> (i32, i32) {
    %c0_i32 = arith.constant 0 : i32
    %c0_i32_0 = arith.constant 0 : i32
    %c0_i32_1 = arith.constant 0 : i32
    return %c0_i32, %c0_i32_0 : i32, i32
  }
  func.func @transform_2(%arg0: i32) -> (i32, i32) {
    %c0_i32 = arith.constant 0 : i32
    %c0_i32_0 = arith.constant 0 : i32
    %c0_i32_1 = arith.constant 0 : i32
    return %c0_i32, %c0_i32_0 : i32, i32
  }
  func.func @transform_3(%arg0: i32) -> (i32, i32) {
    %c0_i32 = arith.constant 0 : i32
    %c0_i32_0 = arith.constant 0 : i32
    %c0_i32_1 = arith.constant 0 : i32
    return %c0_i32, %c0_i32_0 : i32, i32
  }
  func.func @transform_4(%arg0: i32) -> (i32, i32) {
    %c0_i32 = arith.constant 0 : i32
    %c0_i32_0 = arith.constant 0 : i32
    %c0_i32_1 = arith.constant 0 : i32
    return %c0_i32, %c0_i32_0 : i32, i32
  }
  func.func @transform_5(%arg0: i32) -> (i32, i32) {
    %c0_i32 = arith.constant 0 : i32
    %c0_i32_0 = arith.constant 0 : i32
    return %arg0, %c0_i32 : i32, i32
  }
}

</mosaic_0001>

<bundles_post_ra>
// kernel: tpu_custom_call.1
= control target key start
LH: loop header
LB: loop body
LE: loop exit
PB: predicated region body
PF: predicated region fallthrough
CT: control target
= control target key end

     0   :  { %10 = vsyncpa [#allocation3], 0  ;;  %s991_s0 = inlined_call_operand.hbm [shape: f32[128,128], index: 0, kind: input, shape index: {}]   ;;  %s992_s1 = inlined_call_operand.vmem [shape: f32[1,128], index: 1, kind: input, shape index: {}]   ;;  %s993_s2 = inlined_call_operand.vmem [shape: f32[1,128], index: 2, kind: input, shape index: {}]   ;;  %s994_s3 = inlined_call_operand.hbm [shape: bf16[128,128], index: 3, kind: input, shape index: {}]   ;;  %s995_s4 = inlined_call_operand.vmem [shape: f32[1,128], index: 4, kind: input, shape index: {}]   ;;  %s996_s5 = inlined_call_operand.hbm [shape: f32[128,128], index: 5, kind: output, shape index: {}]  }
   0x1   :  { %11 = vsyncpa [#allocation6], 0 }
   0x2   :  { %12 = vsyncpa [#allocation4], 0  ;;  %s718_s18 = smov [#allocation2]  }
   0x3   :  { %s18_s19 = sshll.u32 %s718_s18, 4  ;;  %s19_s19 = int_to_ptr.vmem [resolvable:$true] %s18_s19 }
   0x4   :  { %s660_s20 = scalar_lea.vmem %s19_s19, 2048  ;;  %p665_p1 = scmp.lt.s32.totalorder %s19_s19, %s19_s19 }
   0x5   :  { %p661_p0 = scmp.ne.s32.totalorder %s19_s19, %s660_s20  ;;  %p666_p2 = scmp.lt.s32.totalorder %s660_s20, %s660_s20 }
   0x7   :  { %p667_p3 = por %p666_p2, %p665_p1 }
   0x9   :  { %p668_p4 = pnand %p667_p3, %p661_p0 }
   0xb   :  { %671 = shalt.err (!%p668_p4)
}
   0xc   :  { %s719_s21 = smov 128   ;;  %s720_s22 = smov 8  }
   0xd   :  { %24 = dma.hbm_to_vmem [thread:$0]  %s991_s0, 2048, %s19_s19, [#allocation3], %s719_s21, %s719_s21, %s720_s22  }
   0xe   :  { %s721_s25 = smov [#allocation5]  }
   0xf   :  { %s34_s26 = sshll.u32 %s721_s25, 4  ;;  %s35_s26 = int_to_ptr.vmem [resolvable:$true] %s34_s26 }
  0x10   :  { %s680_s27 = scalar_lea.vmem %s35_s26, 1024  ;;  %p685_p6 = scmp.lt.s32.totalorder %s35_s26, %s35_s26 }
  0x11   :  { %p681_p5 = scmp.ne.s32.totalorder %s35_s26, %s680_s27  ;;  %p686_p7 = scmp.lt.s32.totalorder %s680_s27, %s680_s27 }
  0x13   :  { %p687_p8 = por %p686_p7, %p685_p6 }
  0x15   :  { %p688_p9 = pnand %p687_p8, %p681_p5 }
  0x17   :  { %691 = shalt.err (!%p688_p9)
}
  0x18   :  { %s722_s28 = smov 64   ;;  %s723_s29 = smov 4  }
  0x19   :  { %40 = dma.hbm_to_vmem [thread:$0]  %s994_s3, 1024, %s35_s26, [#allocation6], %s722_s28, %s722_s28, %s723_s29  }
  0x1a   :  { %712 = dma.done.wait [#allocation3], 2048  }
  0x1b   :  { %713 = vsyncadd [#allocation3], 4294965248 }
  0x1c   :  { %714 = dma.done.wait [#allocation6], 1024  }
  0x1d   :  { %715 = vsyncadd [#allocation6], 4294966272  ;;  %v764_v0 = vld [vmem:[#allocation2 + $0x40] sm:$0xff]  ;;  %v770_v2 = vld [vmem:[#allocation2 + $0x48] sm:$0xff] }
  0x1e   :  { %v766_v1 = vld [vmem:[#allocation2] sm:$0xff]  ;;  %82 = vadd.xlane.f32.xlu1 %v764_v0  ;;  %v772_v3 = vld [vmem:[#allocation2 + $0x8] sm:$0xff]  ;;  %v774_v4 = vld [vmem:[#allocation2 + $0x18] sm:$0xff]  ;;  %v107_v10 = vmul.f32 %v770_v2, %v770_v2  ;;  %v106_v11 = vmul.f32 %v764_v0, %v764_v0 }
  0x1f   :  { %66 = vadd.xlane.f32.xlu0 %v766_v1  ;;  %v778_v5 = vld [vmem:[#allocation2 + $0x10] sm:$0xff]  ;;  %v780_v6 = vld [vmem:[#allocation2 + $0x58] sm:$0xff]  ;;  %v99_v8 = vmul.f32 %v772_v3, %v772_v3  ;;  %v98_v9 = vmul.f32 %v766_v1, %v766_v1  ;;  %v101_v12 = vmul.f32 %v774_v4, %v774_v4  ;;  %v804_v16 = vld [vmem:[#allocation2 + $0x28] sm:$0xff] }
  0x20   :  { %v784_v7 = vld [vmem:[#allocation2 + $0x50] sm:$0xff]  ;;  %v100_v13 = vmul.f32 %v778_v5, %v778_v5  ;;  %v109_v14 = vmul.f32 %v780_v6, %v780_v6  ;;  %v806_v17 = vld [vmem:[#allocation2 + $0x20] sm:$0xff]  ;;  %v612_v18 = vld [vmem:[#allocation5 + $0x38] sm:$0xff]   ;;  %v103_v28 = vmul.f32 %v804_v16, %v804_v16 }
  0x21   :  { %v108_v15 = vmul.f32 %v784_v7, %v784_v7  ;;  %557 = vmatprep.subr.bf16.mxu0 %v612_v18  ;;  %589 = vmatprep.subr.bf16.mxu1 %v612_v18  ;;  %v810_v19 = vld [vmem:[#allocation2 + $0x68] sm:$0xff]  ;;  %v812_v20 = vld [vmem:[#allocation2 + $0x60] sm:$0xff]  ;;  %v613_v21 = vld [vmem:[#allocation5 + $0x30] sm:$0xff]   ;;  %v102_v29 = vmul.f32 %v806_v17, %v806_v17 }
  0x22   :  { %84 = vadd.xlane.f32.xlu1 %v770_v2  ;;  %558 = vmatpush3.bf16.msra.mxu0 %v612_v18  ;;  %v816_v22 = vld [vmem:[#allocation2 + $0x38] sm:$0xff]  ;;  %v818_v23 = vld [vmem:[#allocation2 + $0x30] sm:$0xff]  ;;  %v614_v24 = vld [vmem:[#allocation5 + $0x28] sm:$0xff]   ;;  %v111_v31 = vmul.f32 %v810_v19, %v810_v19  ;;  %v110_v32 = vmul.f32 %v812_v20, %v812_v20 }
  0x23   :  { %68 = vadd.xlane.f32.xlu0 %v772_v3  ;;  %597 = vmatpush3.bf16.msra.mxu1 %v612_v18  ;;  %v822_v25 = vld [vmem:[#allocation2 + $0x78] sm:$0xff]  ;;  %v824_v26 = vld [vmem:[#allocation2 + $0x70] sm:$0xff]  ;;  %v615_v27 = vld [vmem:[#allocation5 + $0x20] sm:$0xff]   ;;  %v105_v34 = vmul.f32 %v816_v22, %v816_v22  ;;  %v104_v35 = vmul.f32 %v818_v23, %v818_v23 }
  0x24   :  { %559 = vmatprep.subr.bf16.mxu0 %v613_v21  ;;  %590 = vmatprep.subr.bf16.mxu1 %v613_v21  ;;  %v616_v30 = vld [vmem:[#allocation5 + $0x18] sm:$0xff]   ;;  %v617_v33 = vld [vmem:[#allocation5 + $0x10] sm:$0xff]   ;;  %v618_v36 = vld [vmem:[#allocation5 + $0x8] sm:$0xff]   ;;  %v113_v37 = vmul.f32 %v822_v25, %v822_v25  ;;  %v112_v38 = vmul.f32 %v824_v26, %v824_v26 }
  0x25   :  { %v619_v39 = vld [vmem:[#allocation5] sm:$0xff]  }
  0x26   :  { %72 = vadd.xlane.f32.xlu1 %v774_v4  ;;  %560 = vmatpush3.bf16.msra.mxu0 %v613_v21 }
  0x27   :  { %70 = vadd.xlane.f32.xlu0 %v778_v5  ;;  %598 = vmatpush3.bf16.msra.mxu1 %v613_v21 }
  0x28   :  { %561 = vmatprep.subr.bf16.mxu0 %v614_v24  ;;  %591 = vmatprep.subr.bf16.mxu1 %v614_v24 }
  0x2a   :  { %88 = vadd.xlane.f32.xlu1 %v780_v6  ;;  %562 = vmatpush3.bf16.msra.mxu0 %v614_v24 }
  0x2b   :  { %86 = vadd.xlane.f32.xlu0 %v784_v7  ;;  %599 = vmatpush3.bf16.msra.mxu1 %v614_v24 }
  0x2c   :  { %563 = vmatprep.subr.bf16.mxu0 %v615_v27  ;;  %592 = vmatprep.subr.bf16.mxu1 %v615_v27 }
  0x2e   :  { %116 = vadd.xlane.f32.xlu1 %v99_v8  ;;  %564 = vmatpush3.bf16.msra.mxu0 %v615_v27 }
  0x2f   :  { %114 = vadd.xlane.f32.xlu0 %v98_v9  ;;  %600 = vmatpush3.bf16.msra.mxu1 %v615_v27 }
  0x30   :  { %565 = vmatprep.subr.bf16.mxu0 %v616_v30  ;;  %593 = vmatprep.subr.bf16.mxu1 %v616_v30 }
  0x32   :  { %132 = vadd.xlane.f32.xlu1 %v107_v10  ;;  %566 = vmatpush3.bf16.msra.mxu0 %v616_v30 }
  0x33   :  { %130 = vadd.xlane.f32.xlu0 %v106_v11  ;;  %601 = vmatpush3.bf16.msra.mxu1 %v616_v30 }
  0x34   :  { %567 = vmatprep.subr.bf16.mxu0 %v617_v33  ;;  %594 = vmatprep.subr.bf16.mxu1 %v617_v33 }
  0x36   :  { %120 = vadd.xlane.f32.xlu1 %v101_v12  ;;  %568 = vmatpush3.bf16.msra.mxu0 %v617_v33 }
  0x37   :  { %118 = vadd.xlane.f32.xlu0 %v100_v13  ;;  %602 = vmatpush3.bf16.msra.mxu1 %v617_v33 }
  0x38   :  { %569 = vmatprep.subr.bf16.mxu0 %v618_v36  ;;  %595 = vmatprep.subr.bf16.mxu1 %v618_v36 }
  0x3a   :  { %136 = vadd.xlane.f32.xlu1 %v109_v14  ;;  %570 = vmatpush3.bf16.msra.mxu0 %v618_v36 }
  0x3b   :  { %134 = vadd.xlane.f32.xlu0 %v108_v15  ;;  %603 = vmatpush3.bf16.msra.mxu1 %v618_v36 }
  0x3c   :  { %571 = vmatprep.subr.bf16.mxu0 %v619_v39  ;;  %596 = vmatprep.subr.bf16.mxu1 %v619_v39 }
  0x3e   :  { %76 = vadd.xlane.f32.xlu1 %v804_v16  ;;  %572 = vmatpush3.bf16.msra.mxu0 %v619_v39 }
  0x3f   :  { %74 = vadd.xlane.f32.xlu0 %v806_v17  ;;  %604 = vmatpush3.bf16.msra.mxu1 %v619_v39 }
  0x42   :  { %92 = vadd.xlane.f32.xlu1 %v810_v19 }
  0x43   :  { %90 = vadd.xlane.f32.xlu0 %v812_v20 }
  0x46   :  { %80 = vadd.xlane.f32.xlu1 %v816_v22 }
  0x47   :  { %78 = vadd.xlane.f32.xlu0 %v818_v23 }
  0x4a   :  { %96 = vadd.xlane.f32.xlu1 %v822_v25 }
  0x4b   :  { %94 = vadd.xlane.f32.xlu0 %v824_v26 }
  0x4e   :  { %124 = vadd.xlane.f32.xlu1 %v103_v28 }
  0x4f   :  { %122 = vadd.xlane.f32.xlu0 %v102_v29 }
  0x52   :  { %140 = vadd.xlane.f32.xlu1 %v111_v31 }
  0x53   :  { %138 = vadd.xlane.f32.xlu0 %v110_v32 }
  0x56   :  { %128 = vadd.xlane.f32.xlu1 %v105_v34 }
  0x57   :  { %126 = vadd.xlane.f32.xlu0 %v104_v35 }
  0x5a   :  { %144 = vadd.xlane.f32.xlu1 %v113_v37 }
  0x5b   :  { %142 = vadd.xlane.f32.xlu0 %v112_v38 }
  0xa7   :  { %v83_v40 = vpop.xlane.xlu1 %82 }
  0xa8   :  { %v67_v41 = vpop.xlane.xlu0 %66  ;;  %v848_v50 = vmul.f32 0.03125, %v83_v40 }
  0xa9   :  { %v844_v48 = vmul.f32 0.03125, %v67_v41 }
  0xaa   :  { %v186_v61 = vmul.f32 %v848_v50, %v848_v50 }
  0xab   :  { %v85_v42 = vpop.xlane.xlu1 %84  ;;  %v178_v54 = vmul.f32 %v844_v48, %v844_v48 }
  0xac   :  { %v69_v43 = vpop.xlane.xlu0 %68  ;;  %v850_v51 = vmul.f32 0.03125, %v85_v42 }
  0xad   :  { %v846_v49 = vmul.f32 0.03125, %v69_v43 }
  0xae   :  { %v187_v62 = vmul.f32 %v850_v51, %v850_v51 }
  0xaf   :  { %v73_v44 = vpop.xlane.xlu1 %72  ;;  %v179_v55 = vmul.f32 %v846_v49, %v846_v49 }
  0xb0   :  { %v71_v45 = vpop.xlane.xlu0 %70  ;;  %v856_v58 = vmul.f32 0.03125, %v73_v44 }
  0xb1   :  { %v862_v63 = vmul.f32 0.03125, %v71_v45 }
  0xb2   :  { %v181_v14 = vmul.f32 %v856_v58, %v856_v58 }
  0xb3   :  { %v89_v46 = vpop.xlane.xlu1 %88  ;;  %v180_v21 = vmul.f32 %v862_v63, %v862_v63 }
  0xb4   :  { %v87_v47 = vpop.xlane.xlu0 %86  ;;  %v868_v24 = vmul.f32 0.03125, %v89_v46 }
  0xb5   :  { %v870_v27 = vmul.f32 0.03125, %v87_v47 }
  0xb6   :  { %v189_v36 = vmul.f32 %v868_v24, %v868_v24 }
  0xb7   :  { %v117_v52 = vpop.xlane.xlu1 %116  ;;  %v188_v37 = vmul.f32 %v870_v27, %v870_v27 }
  0xb8   :  { %v115_v53 = vpop.xlane.xlu0 %114  ;;  %v163_v56 = vmul.f32 0.03125, %v117_v52 }
  0xb9   :  { %v162_v57 = vmul.f32 0.03125, %v115_v53 }
  0xba   :  { %v195_v59 = vsub.f32 %v163_v56, %v179_v55  ;;  %v242_v56 = vsub.f32 %v766_v1, %v844_v48  ;;  %v250_v48 = vsub.f32 %v764_v0, %v848_v50  ;;  %v244_v0 = vsub.f32 %v778_v5, %v862_v63 }
  0xbb   :  { %v194_v60 = vsub.f32 %v162_v57, %v178_v54  ;;  %v133_v8 = vpop.xlane.xlu1 %132  ;;  %v243_v54 = vsub.f32 %v772_v3, %v846_v49  ;;  %v890_v3 = vld [vmem:[%s993_s2] ss:$0 sm:$0xff]  ;;  %v253_v5 = vsub.f32 %v780_v6, %v868_v24  ;;  %v252_v63 = vsub.f32 %v784_v7, %v870_v27 }
  0xbc   :  { %v131_v9 = vpop.xlane.xlu0 %130  ;;  %v211_v10 = vadd.f32 1e-05, %v195_v59  ;;  %v171_v12 = vmul.f32 0.03125, %v133_v8 }
  0xbd   :  { %v210_v11 = vadd.f32 1e-05, %v194_v60  ;;  %v170_v13 = vmul.f32 0.03125, %v131_v9  ;;  %v251_v9 = vsub.f32 %v770_v2, %v850_v51 }
  0xbe   :  { %620 = vrsqrt.f32 %v211_v10  ;;  %v203_v15 = vsub.f32 %v171_v12, %v187_v62  ;;  %v883_v62 = vld [vmem:[%s992_s1] ss:$0 sm:$0xff] }
  0xbf   :  { %v202_v18 = vsub.f32 %v170_v13, %v186_v61  ;;  %622 = vrsqrt.f32 %v210_v11  ;;  %v121_v28 = vpop.xlane.xlu1 %120 }
  0xc0   :  { %v119_v29 = vpop.xlane.xlu0 %118  ;;  %v219_v30 = vadd.f32 1e-05, %v203_v15  ;;  %v165_v32 = vmul.f32 0.03125, %v121_v28 }
  0xc1   :  { %v218_v31 = vadd.f32 1e-05, %v202_v18  ;;  %v164_v33 = vmul.f32 0.03125, %v119_v29  ;;  %v245_v18 = vsub.f32 %v774_v4, %v856_v58 }
  0xc2   :  { %624 = vrsqrt.f32 %v219_v30  ;;  %v197_v34 = vsub.f32 %v165_v32, %v181_v14 }
  0xc3   :  { %v196_v35 = vsub.f32 %v164_v33, %v180_v21  ;;  %626 = vrsqrt.f32 %v218_v31  ;;  %v137_v38 = vpop.xlane.xlu1 %136 }
  0xc4   :  { %v135_v39 = vpop.xlane.xlu0 %134  ;;  %v213_v40 = vadd.f32 1e-05, %v197_v34  ;;  %v173_v42 = vmul.f32 0.03125, %v137_v38 }
  0xc5   :  { %v212_v41 = vadd.f32 1e-05, %v196_v35  ;;  %v172_v43 = vmul.f32 0.03125, %v135_v39 }
  0xc6   :  { %628 = vrsqrt.f32 %v213_v40  ;;  %v205_v44 = vsub.f32 %v173_v42, %v189_v36 }
  0xc7   :  { %v204_v45 = vsub.f32 %v172_v43, %v188_v37  ;;  %630 = vrsqrt.f32 %v212_v41  ;;  %v77_v46 = vpop.xlane.xlu1 %76 }
  0xc8   :  { %v75_v47 = vpop.xlane.xlu0 %74  ;;  %v221_v52 = vadd.f32 1e-05, %v205_v44  ;;  %v900_v21 = vmul.f32 0.03125, %v77_v46 }
  0xc9   :  { %v220_v53 = vadd.f32 1e-05, %v204_v45  ;;  %v906_v34 = vmul.f32 0.03125, %v75_v47 }
  0xca   :  { %632 = vrsqrt.f32 %v221_v52  ;;  %v183_v37 = vmul.f32 %v900_v21, %v900_v21 }
  0xcb   :  { %v621_v55 = vpop.eup %620  ;;  %634 = vrsqrt.f32 %v220_v53  ;;  %v93_v57 = vpop.xlane.xlu1 %92  ;;  %v182_v6 = vmul.f32 %v906_v34, %v906_v34 }
  0xcc   :  { %v91_v59 = vpop.xlane.xlu0 %90  ;;  %v623_v60 = vpop.eup %622  ;;  %v259_v61 = vmul.f32 %v621_v55, %v243_v54  ;;  %v916_v38 = vmul.f32 0.03125, %v93_v57 }
  0xcd   :  { %v258_v8 = vmul.f32 %v623_v60, %v242_v56  ;;  %v918_v40 = vmul.f32 0.03125, %v91_v59 }
  0xce   :  { %v282_v12 = vmul.f32 %v883_v62, %v259_v61  ;;  %v191_v60 = vmul.f32 %v916_v38, %v916_v38 }
  0xcf   :  { %v625_v1 = vpop.eup %624  ;;  %v81_v49 = vpop.xlane.xlu1 %80  ;;  %v281_v11 = vmul.f32 %v883_v62, %v258_v8  ;;  %v190_v61 = vmul.f32 %v918_v40, %v918_v40 }
  0xd0   :  { %v79_v10 = vpop.xlane.xlu0 %78  ;;  %v627_v13 = vpop.eup %626  ;;  %v267_v14 = vmul.f32 %v625_v1, %v251_v9  ;;  %v305_v2 = vadd.f32 %v890_v3, %v282_v12  ;;  %v924_v47 = vmul.f32 0.03125, %v81_v49 }
  0xd1   :  { %v304_v15 = vadd.f32 %v890_v3, %v281_v11  ;;  %v266_v51 = vmul.f32 %v627_v13, %v250_v48  ;;  %v928_v55 = vmul.f32 0.03125, %v79_v10 }
  0xd2   :  { %v290_v32 = vmul.f32 %v883_v62, %v267_v14  ;;  %v185_v13 = vmul.f32 %v924_v47, %v924_v47 }
  0xd3   :  { %v629_v28 = vpop.eup %628  ;;  %v97_v50 = vpop.xlane.xlu1 %96  ;;  %v320_v30 = vpack.c.bf16 %v305_v2, %v304_v15  ;;  %v289_v31 = vmul.f32 %v883_v62, %v266_v51  ;;  %v184_v2 = vmul.f32 %v928_v55, %v928_v55 }
  0xd4   :  { %v95_v29 = vpop.xlane.xlu0 %94  ;;  %v631_v33 = vpop.eup %630  ;;  %v261_v35 = vmul.f32 %v629_v28, %v245_v18  ;;  %v313_v58 = vadd.f32 %v890_v3, %v290_v32  ;;  %v942_v28 = vmul.f32 0.03125, %v97_v50 }
  0xd5   :  { %573 = vmatprep.mubr.bf16.mxu0 %v320_v30  ;;  %v312_v4 = vadd.f32 %v890_v3, %v289_v31  ;;  %v260_v36 = vmul.f32 %v631_v33, %v244_v0  ;;  %v944_v0 = vmul.f32 0.03125, %v95_v29 }
  0xd6   :  { %v284_v45 = vmul.f32 %v883_v62, %v261_v35 }
  0xd7   :  { %v633_v39 = vpop.eup %632  ;;  %v125_v41 = vpop.xlane.xlu1 %124  ;;  %v324_v43 = vpack.c.bf16 %v313_v58, %v312_v4  ;;  %v283_v44 = vmul.f32 %v883_v62, %v260_v36  ;;  %v192_v50 = vmul.f32 %v944_v0, %v944_v0 }
  0xd8   :  { %v123_v42 = vpop.xlane.xlu0 %122  ;;  %v635_v46 = vpop.eup %634  ;;  %v167_v7 = vmul.f32 0.03125, %v125_v41  ;;  %v269_v27 = vmul.f32 %v633_v39, %v253_v5  ;;  %v307_v53 = vadd.f32 %v890_v3, %v284_v45 }
  0xd9   :  { %v166_v24 = vmul.f32 0.03125, %v123_v42  ;;  %581 = vmatprep.mubr.bf16.mxu1 %v324_v43  ;;  %v306_v52 = vadd.f32 %v890_v3, %v283_v44  ;;  %v268_v54 = vmul.f32 %v635_v46, %v252_v63  ;;  %v193_v63 = vmul.f32 %v942_v28, %v942_v28 }
  0xda   :  { %v199_v56 = vsub.f32 %v167_v7, %v183_v37  ;;  %v292_v59 = vmul.f32 %v883_v62, %v269_v27  ;;  %v247_v7 = vsub.f32 %v804_v16, %v900_v21  ;;  %v246_v27 = vsub.f32 %v806_v17, %v906_v34 }
  0xdb   :  { %v198_v57 = vsub.f32 %v166_v24, %v182_v6  ;;  %v141_v8 = vpop.xlane.xlu1 %140  ;;  %v321_v1 = vpack.c.bf16 %v307_v53, %v306_v52  ;;  %v291_v48 = vmul.f32 %v883_v62, %v268_v54 }
  0xdc   :  { %v139_v9 = vpop.xlane.xlu0 %138  ;;  %v215_v49 = vadd.f32 1e-05, %v199_v56  ;;  %v175_v12 = vmul.f32 0.03125, %v141_v8  ;;  %v315_v15 = vadd.f32 %v890_v3, %v292_v59  ;;  %v255_v56 = vsub.f32 %v810_v19, %v916_v38 }
  0xdd   :  { %v214_v11 = vadd.f32 1e-05, %v198_v57  ;;  %v174_v10 = vmul.f32 0.03125, %v139_v9  ;;  %574 = vmatmul.mubr.bf16.vlgmr.msra.gmra.mxu0 %v321_v1  ;;  %v314_v14 = vadd.f32 %v890_v3, %v291_v48  ;;  %v249_v9 = vsub.f32 %v816_v22, %v924_v47 }
  0xde   :  { %636 = vrsqrt.f32 %v215_v49  ;;  %v207_v51 = vsub.f32 %v175_v12, %v191_v60  ;;  %v254_v60 = vsub.f32 %v812_v20, %v918_v40  ;;  %v248_v1 = vsub.f32 %v818_v23, %v928_v55 }
  0xdf   :  { %v206_v18 = vsub.f32 %v174_v10, %v190_v61  ;;  %638 = vrsqrt.f32 %v214_v11  ;;  %v129_v30 = vpop.xlane.xlu1 %128  ;;  %v325_v32 = vpack.c.bf16 %v315_v15, %v314_v14  ;;  %v257_v22 = vsub.f32 %v822_v25, %v942_v28 }
  0xe0   :  { %v127_v31 = vpop.xlane.xlu0 %126  ;;  %v223_v33 = vadd.f32 1e-05, %v207_v51  ;;  %v169_v4 = vmul.f32 0.03125, %v129_v30  ;;  %v256_v23 = vsub.f32 %v824_v26, %v944_v0 }
  0xe1   :  { %v222_v35 = vadd.f32 1e-05, %v206_v18  ;;  %v168_v58 = vmul.f32 0.03125, %v127_v31  ;;  %582 = vmatmul.mubr.bf16.vlgmr.msra.gmra.mxu1 %v325_v32 }
  0xe2   :  { %640 = vrsqrt.f32 %v223_v33  ;;  %v201_v36 = vsub.f32 %v169_v4, %v185_v13  ;;  %v532_v33 = vld [vmem:[%s995_s4] ss:$0 sm:$0xff]  ;;  %s724_s4 = smov [#allocation7]  }
  0xe3   :  { %v200_v5 = vsub.f32 %v168_v58, %v184_v2  ;;  %642 = vrsqrt.f32 %v222_v35  ;;  %v145_v29 = vpop.xlane.xlu1 %144  ;;  %s517_s9 = sshll.u32 %s724_s4, 4  ;;  %s518_s9 = int_to_ptr.vmem [resolvable:$true] %s517_s9 }
  0xe4   :  { %v143_v37 = vpop.xlane.xlu0 %142  ;;  %v217_v39 = vadd.f32 1e-05, %v201_v36  ;;  %v177_v42 = vmul.f32 0.03125, %v145_v29  ;;  %s692_s10 = scalar_lea.vmem %s518_s9, 2048  ;;  %p697_p11 = scmp.lt.s32.totalorder %s518_s9, %s518_s9 }
  0xe5   :  { %v216_v41 = vadd.f32 1e-05, %v200_v5  ;;  %v176_v43 = vmul.f32 0.03125, %v143_v37  ;;  %p693_p10 = scmp.ne.s32.totalorder %s518_s9, %s692_s10  ;;  %p698_p12 = scmp.lt.s32.totalorder %s692_s10, %s692_s10 }
  0xe6   :  { %644 = vrsqrt.f32 %v217_v39  ;;  %v209_v44 = vsub.f32 %v177_v42, %v193_v63 }
  0xe7   :  { %v208_v45 = vsub.f32 %v176_v43, %v192_v50  ;;  %646 = vrsqrt.f32 %v216_v41  ;;  %p699_p13 = por %p698_p12, %p697_p11 }
  0xe8   :  { %v225_v46 = vadd.f32 1e-05, %v209_v44 }
  0xe9   :  { %v224_v6 = vadd.f32 1e-05, %v208_v45  ;;  %p700_p0 = pnand %p699_p13, %p693_p10 }
  0xea   :  { %648 = vrsqrt.f32 %v225_v46 }
  0xeb   :  { %v637_v24 = vpop.eup %636  ;;  %650 = vrsqrt.f32 %v224_v6 }
  0xec   :  { %v639_v52 = vpop.eup %638  ;;  %v263_v53 = vmul.f32 %v637_v24, %v247_v7 }
  0xed   :  { %v262_v54 = vmul.f32 %v639_v52, %v246_v27 }
  0xee   :  { %v286_v57 = vmul.f32 %v883_v62, %v263_v53 }
  0xef   :  { %v641_v59 = vpop.eup %640  ;;  %v285_v16 = vmul.f32 %v883_v62, %v262_v54 }
  0xf0   :  { %v643_v21 = vpop.eup %642  ;;  %v309_v61 = vadd.f32 %v890_v3, %v286_v57  ;;  %v271_v8 = vmul.f32 %v641_v59, %v255_v56 }
  0xf1   :  { %v308_v17 = vadd.f32 %v890_v3, %v285_v16  ;;  %v270_v34 = vmul.f32 %v643_v21, %v254_v60 }
  0xf2   :  { %v294_v19 = vmul.f32 %v883_v62, %v271_v8 }
  0xf3   :  { %v645_v38 = vpop.eup %644  ;;  %v322_v48 = vpack.c.bf16 %v309_v61, %v308_v17  ;;  %v293_v20 = vmul.f32 %v883_v62, %v270_v34 }
  0xf4   :  { %v647_v40 = vpop.eup %646  ;;  %v317_v49 = vadd.f32 %v890_v3, %v294_v19  ;;  %v265_v11 = vmul.f32 %v645_v38, %v249_v9 }
  0xf5   :  { %577 = vmatprep.mubr.bf16.mxu0 %v322_v48  ;;  %v316_v12 = vadd.f32 %v890_v3, %v293_v20  ;;  %v264_v10 = vmul.f32 %v647_v40, %v248_v1 }
  0xf6   :  { %v288_v47 = vmul.f32 %v883_v62, %v265_v11 }
  0xf7   :  { %v649_v13 = vpop.eup %648  ;;  %v326_v55 = vpack.c.bf16 %v317_v49, %v316_v12  ;;  %v287_v14 = vmul.f32 %v883_v62, %v264_v10 }
  0xf8   :  { %v651_v15 = vpop.eup %650  ;;  %v311_v2 = vadd.f32 %v890_v3, %v288_v47  ;;  %v273_v51 = vmul.f32 %v649_v13, %v257_v22 }
  0xf9   :  { %585 = vmatprep.mubr.bf16.mxu1 %v326_v55  ;;  %v310_v18 = vadd.f32 %v890_v3, %v287_v14  ;;  %v272_v30 = vmul.f32 %v651_v15, %v256_v23 }
  0xfa   :  { %v296_v31 = vmul.f32 %v883_v62, %v273_v51 }
  0xfb   :  { %v323_v25 = vpack.c.bf16 %v311_v2, %v310_v18  ;;  %v295_v28 = vmul.f32 %v883_v62, %v272_v30 }
  0xfc   :  { %v319_v32 = vadd.f32 %v890_v3, %v296_v31 }
  0xfd   :  { %578 = vmatmul.mubr.bf16.gmra.mxu0 %v323_v25  ;;  %v318_v26 = vadd.f32 %v890_v3, %v295_v28 }
  0xff   :  { %v327_v0 = vpack.c.bf16 %v319_v32, %v318_v26 }
 0x101   :  { %586 = vmatmul.mubr.bf16.gmra.mxu1 %v327_v0 }
 0x19d   :  { %v575_v35 = vpop.f32.mrf.mxu0 }
 0x19e   :  { %v442_v4 = vadd.f32 %v575_v35, %v532_v33 }
 0x19f   :  { %v433_v58 = vpop.f32.mrf.mxu0 }
 0x1a0   :  { %498 = vst [vmem:[#allocation7 + $0x10] sm:$0xff] %v442_v4  ;;  %v434_v36 = vadd.f32 %v532_v33, %v433_v58 }
 0x1a1   :  { %v576_v5 = vpop.f32.mrf.mxu0  ;;  %v583_v63 = vpop.f32.mrf.mxu1 }
 0x1a2   :  { %496 = vst [vmem:[#allocation7] sm:$0xff] %v434_v36  ;;  %v445_v62 = vadd.f32 %v576_v5, %v532_v33  ;;  %v474_v50 = vadd.f32 %v583_v63, %v532_v33 }
 0x1a3   :  { %v436_v29 = vpop.f32.mrf.mxu0  ;;  %v465_v37 = vpop.f32.mrf.mxu1 }
 0x1a4   :  { %499 = vst [vmem:[#allocation7 + $0x18] sm:$0xff] %v445_v62  ;;  %506 = vst [vmem:[#allocation7 + $0x50] sm:$0xff] %v474_v50  ;;  %v437_v3 = vadd.f32 %v532_v33, %v436_v29  ;;  %v466_v39 = vadd.f32 %v532_v33, %v465_v37 }
 0x1a5   :  { %v584_v41 = vpop.f32.mrf.mxu1 }
 0x1a6   :  { %497 = vst [vmem:[#allocation7 + $0x8] sm:$0xff] %v437_v3  ;;  %504 = vst [vmem:[#allocation7 + $0x40] sm:$0xff] %v466_v39  ;;  %v477_v42 = vadd.f32 %v584_v41, %v532_v33 }
 0x1a7   :  { %v468_v43 = vpop.f32.mrf.mxu1 }
 0x1a8   :  { %507 = vst [vmem:[#allocation7 + $0x58] sm:$0xff] %v477_v42  ;;  %v469_v44 = vadd.f32 %v532_v33, %v468_v43 }
 0x1aa   :  { %505 = vst [vmem:[#allocation7 + $0x48] sm:$0xff] %v469_v44 }
 0x1bd   :  { %v579_v45 = vpop.f32.mrf.mxu0 }
 0x1be   :  { %v458_v46 = vadd.f32 %v579_v45, %v532_v33 }
 0x1bf   :  { %v449_v6 = vpop.f32.mrf.mxu0 }
 0x1c0   :  { %502 = vst [vmem:[#allocation7 + $0x30] sm:$0xff] %v458_v46  ;;  %v450_v7 = vadd.f32 %v532_v33, %v449_v6 }
 0x1c1   :  { %v580_v24 = vpop.f32.mrf.mxu0  ;;  %v587_v27 = vpop.f32.mrf.mxu1 }
 0x1c2   :  { %500 = vst [vmem:[#allocation7 + $0x20] sm:$0xff] %v450_v7  ;;  %v461_v52 = vadd.f32 %v580_v24, %v532_v33  ;;  %v490_v53 = vadd.f32 %v587_v27, %v532_v33 }
 0x1c3   :  { %v452_v54 = vpop.f32.mrf.mxu0  ;;  %v481_v56 = vpop.f32.mrf.mxu1 }
 0x1c4   :  { %503 = vst [vmem:[#allocation7 + $0x38] sm:$0xff] %v461_v52  ;;  %510 = vst [vmem:[#allocation7 + $0x70] sm:$0xff] %v490_v53  ;;  %v453_v57 = vadd.f32 %v532_v33, %v452_v54  ;;  %v482_v59 = vadd.f32 %v532_v33, %v481_v56 }
 0x1c5   :  { %v588_v60 = vpop.f32.mrf.mxu1 }
 0x1c6   :  { %501 = vst [vmem:[#allocation7 + $0x28] sm:$0xff] %v453_v57  ;;  %508 = vst [vmem:[#allocation7 + $0x60] sm:$0xff] %v482_v59  ;;  %v493_v16 = vadd.f32 %v588_v60, %v532_v33 }
 0x1c7   :  { %v484_v21 = vpop.f32.mrf.mxu1 }
 0x1c8   :  { %511 = vst [vmem:[#allocation7 + $0x78] sm:$0xff] %v493_v16  ;;  %v485_v61 = vadd.f32 %v532_v33, %v484_v21 }
 0x1ca   :  { %509 = vst [vmem:[#allocation7 + $0x68] sm:$0xff] %v485_v61 }
 0x1cb   :  { %703 = shalt.err (!%p700_p0)
}
 0x1cc   :  { %523 = dma.vmem_to_hbm [thread:$0]  %s518_s9, 2048, %s996_s5, [#allocation4], %s719_s21, %s719_s21, %s720_s22  }
 0x1cd   :  { %716 = dma.done.wait [#allocation4], 2048  }
 0x1ce   :  { %717 = vsyncadd [#allocation4], 4294965248 }
 0x1cf   :  { %527 = vsyncpa [#allocation3], 1 }
 0x1d0   :  { %528 = vsyncpa [#allocation6], 1 }
 0x1d1   :  { %529 = vsyncpa [#allocation4], 1 }

</bundles_post_ra>
